<compile_context>
chip_gen: v5e
topology: v5e:2x2
jax: 0.10.0
libtpu: 0.0.40
codegen_flags: <defaults>
</compile_context>

<pallas_src>
import functools

import jax
import jax.numpy as jnp
from jax.experimental import pallas as pl
from jax.experimental.pallas import tpu as pltpu


def _round_up(x, m):
    return ((x + m - 1) // m) * m


def _pick_tile(n, target, align):
    """Largest multiple of `align` that divides n and is <= target (else n)."""
    if n <= target:
        return n
    t = (target // align) * align
    while t >= align:
        if n % t == 0:
            return t
        t -= align
    return n


def support_kernel(x_ref, w_ref, s_ref):
    # support tile = X_tile @ W   (bf16 MXU inputs, f32 accumulate, bf16 out)
    s_ref[...] = jnp.dot(
        x_ref[...].astype(jnp.bfloat16), w_ref[...],
        preferred_element_type=jnp.float32,
    ).astype(s_ref.dtype)


def aggregate_kernel(adj_ref, s_ref, b_ref, o_ref, acc_ref, *, tile_k):
    # out tile = sum_k adj[i, k] @ support[k, :]  + b   (bias in finalize)
    k = pl.program_id(1)

    @pl.when(k == 0)
    def _():
        acc_ref[...] = jnp.zeros_like(acc_ref)

    if s_ref.shape[0] == tile_k:
        # Streamed path: s_ref already is the current K tile.
        s = s_ref[...]
    else:
        # Resident path: full support lives in VMEM; slice the K tile.
        start = pl.multiple_of(k * tile_k, 128)
        s = s_ref[pl.ds(start, tile_k), :]

    # adj streamed f32 from HBM; cast to bf16 here (free filler on a
    # bandwidth-bound kernel) so the MXU runs at bf16 rate. f32 accumulation.
    acc_ref[...] += jnp.dot(
        adj_ref[...].astype(jnp.bfloat16), s,
        preferred_element_type=jnp.float32,
    )

    @pl.when(k == pl.num_programs(1) - 1)
    def _():
        o_ref[...] = (acc_ref[...] + b_ref[...]).astype(o_ref.dtype)


def graph_convolution(x, w, adj, b, *, tile_n=None, tile_k=None, tile_m=None):
    """Computes adj @ (x @ w) + b with two Pallas TPU kernels.

    x:   (N, in_dim)  float32
    w:   (in_dim, out_dim) float32
    adj: (N, N) float32 (dense Laplacian)
    b:   (out_dim,) float32
    returns (N, out_dim) float32
    """
    N, in_dim = x.shape
    out_dim = w.shape[1]
    assert adj.shape == (N, N)

    # Lane-dense output: pad out_dim to a multiple of 128.
    out_dim_p = _round_up(out_dim, 128)
    # Pad node count to a multiple of 256 so tiles stay bounded & aligned
    # (no silent fallback to a giant (N, N) block for awkward N).
    n_p = _round_up(N, 256)

    if out_dim_p != out_dim:
        w = jnp.pad(w, ((0, 0), (0, out_dim_p - out_dim)))
        b = jnp.pad(b, (0, out_dim_p - out_dim))
    if n_p != N:
        x = jnp.pad(x, ((0, n_p - N), (0, 0)))
        adj = jnp.pad(adj, ((0, n_p - N), (0, n_p - N)))

    x = x.astype(jnp.float32)
    adj = adj.astype(jnp.float32)           # streamed f32, cast in-kernel
    w_bf16 = w.astype(jnp.bfloat16)         # tiny; pre-cast is fine
    b2d = b.reshape(1, out_dim_p).astype(jnp.float32)

    # Tile sizes (divisors of the padded N; n_p is a multiple of 256 so the
    # search always finds something in [256, target]).
    tile_m = tile_m or _pick_tile(n_p, 512, 16)     # support row tile (bf16 out)
    tile_n = tile_n or _pick_tile(n_p, 512, 16)     # output row tile
    tile_k = tile_k or _pick_tile(n_p, 1024, 128)   # reduction (K) tile

    # Megacore: guarantee at least 2 row tiles so the parallel axis can split
    # across two TensorCores (v7x).
    if n_p // tile_n < 2:
        tile_n = max(16, n_p // 2)   # n_p is a multiple of 256 -> divides cleanly

    # ---- Kernel 1: support = X @ W  (computed once, emitted as bf16) ----
    sup_vmem = 2 * (tile_m * in_dim * 4
                    + in_dim * out_dim_p * 2
                    + tile_m * out_dim_p * 2)
    support = pl.pallas_call(
        support_kernel,
        out_shape=jax.ShapeDtypeStruct((n_p, out_dim_p), jnp.bfloat16),
        grid_spec=pltpu.PrefetchScalarGridSpec(
            num_scalar_prefetch=0,
            grid=(n_p // tile_m,),
            in_specs=[
                pl.BlockSpec((tile_m, in_dim), lambda i: (i, 0)),
                pl.BlockSpec((in_dim, out_dim_p), lambda i: (0, 0)),
            ],
            out_specs=pl.BlockSpec((tile_m, out_dim_p), lambda i: (i, 0)),
        ),
        compiler_params=pltpu.CompilerParams(
            dimension_semantics=("parallel",),
            vmem_limit_bytes=int(min(48 << 20, max(32 << 20, 2 * sup_vmem))),
        ),
    )(x, w_bf16)

    # Keep the whole (padded) support resident in VMEM when small: kills the
    # per-row-tile HBM re-read.  Budget includes a 2x double-buffer margin.
    sup_bytes = n_p * out_dim_p * 2
    support_resident = (2 * sup_bytes) <= (8 << 20)

    if support_resident:
        s_spec = pl.BlockSpec((n_p, out_dim_p), lambda i, k: (0, 0))
        s_vmem = 2 * sup_bytes
    else:
        s_spec = pl.BlockSpec((tile_k, out_dim_p), lambda i, k: (k, 0))
        s_vmem = 2 * tile_k * out_dim_p * 2

    # ---- Kernel 2: out = adj @ support + b (row tiles x K-reduction) ----
    agg_vmem = (2 * tile_n * tile_k * 4          # adj tiles (f32, dbl-buf)
                + s_vmem                          # support (resident or tiles)
                + 2 * tile_n * out_dim_p * 4      # output tiles (f32)
                + tile_n * out_dim_p * 4          # accumulator scratch
                + 2 * out_dim_p * 4)              # bias
    out = pl.pallas_call(
        functools.partial(aggregate_kernel, tile_k=tile_k),
        out_shape=jax.ShapeDtypeStruct((n_p, out_dim_p), jnp.float32),
        grid_spec=pltpu.PrefetchScalarGridSpec(
            num_scalar_prefetch=0,
            grid=(n_p // tile_n, n_p // tile_k),
            in_specs=[
                pl.BlockSpec((tile_n, tile_k), lambda i, k: (i, k)),
                s_spec,
                pl.BlockSpec((1, out_dim_p), lambda i, k: (0, 0)),
            ],
            out_specs=pl.BlockSpec((tile_n, out_dim_p), lambda i, k: (i, 0)),
            scratch_shapes=[pltpu.VMEM((tile_n, out_dim_p), jnp.float32)],
        ),
        compiler_params=pltpu.CompilerParams(
            dimension_semantics=("parallel", "arbitrary"),
            vmem_limit_bytes=int(min(48 << 20, max(32 << 20, 2 * agg_vmem))),
        ),
    )(adj, support, b2d)

    if n_p != N or out_dim_p != out_dim:
        out = out[:N, :out_dim]
    return out


def xavier_uniform(key, shape, dtype=jnp.float32):
    fan_in, fan_out = shape
    bound = (6.0 / (fan_in + fan_out)) ** 0.5
    return jax.random.uniform(key, shape, dtype, minval=-bound, maxval=bound)


if __name__ == "__main__":
    # Small, deterministic example shapes (deliberately non-aligned to
    # exercise the padding paths: N -> 256, out_dim -> 128).
    N = 200        # number of graph nodes
    in_dim = 48    # input feature dimension
    out_dim = 96   # output feature dimension

    key = jax.random.PRNGKey(0)
    k_x, k_adj, k_w = jax.random.split(key, 3)

    x = jax.random.normal(k_x, (N, in_dim), dtype=jnp.float32)

    # Dense symmetric-normalized adjacency-like matrix (stand-in Laplacian).
    a_raw = jax.random.uniform(k_adj, (N, N), dtype=jnp.float32)
    a_sym = 0.5 * (a_raw + a_raw.T) + jnp.eye(N, dtype=jnp.float32)
    deg = jnp.sum(a_sym, axis=1)
    d_inv_sqrt = 1.0 / jnp.sqrt(deg)
    adj = a_sym * d_inv_sqrt[:, None] * d_inv_sqrt[None, :]

    # Parameters: W xavier-uniform, b zeros (matches torch init semantics).
    w = xavier_uniform(k_w, (in_dim, out_dim))
    b = jnp.zeros((out_dim,), dtype=jnp.float32)

    out = graph_convolution(x, w, adj, b)
    out = jax.block_until_ready(out)

    # Reference check (plain JAX, f32). Kernel uses bf16 MXU inputs with f32
    # accumulation, so tolerance is widened accordingly (values are O(1)).
    ref = adj @ (x @ w) + b[None, :]
    assert out.shape == (N, out_dim)
    assert jnp.allclose(out, ref, atol=2e-2, rtol=2e-2), "mismatch vs reference"

    print("KERNEL_OK")
</pallas_src>

<mosaic_0001>
module attributes {stable_mosaic.version = 11 : i64} {
  func.func @support_kernel(%arg0: i32, %arg1: memref<256x48xf32, #tpu.memory_space<vmem>>, %arg2: memref<48x128xbf16, #tpu.memory_space<vmem>>, %arg3: memref<256x128xbf16, #tpu.memory_space<vmem>>) attributes {dimension_semantics = [#tpu.dimension_semantics<parallel>], iteration_bounds = array<i64: 1>, scalar_prefetch = 0 : i64, scratch_operands = 0 : i64, tpu.core_type = #tpu.core_type<tc>, window_params = [{transform_indices = @transform_0, window_bounds = array<i64: 256, 48>}, {pipeline_mode = #tpu.pipeline_mode<synchronous>, transform_indices = @transform_1, window_bounds = array<i64: 48, 128>}, {transform_indices = @transform_2, window_bounds = array<i64: 256, 128>}]} {
    %c0 = arith.constant 0 : index
    %c0_0 = arith.constant 0 : index
    %0 = vector.load %arg1[%c0, %c0_0] : memref<256x48xf32, #tpu.memory_space<vmem>>, vector<256x48xf32>
    %1 = arith.truncf %0 : vector<256x48xf32> to vector<256x48xbf16>
    %c0_1 = arith.constant 0 : index
    %c0_2 = arith.constant 0 : index
    %2 = vector.load %arg2[%c0_1, %c0_2] : memref<48x128xbf16, #tpu.memory_space<vmem>>, vector<48x128xbf16>
    %cst = arith.constant dense<0.000000e+00> : vector<256x128xf32>
    %3 = tpu.matmul %1, %2, %cst {dimension_numbers = #tpu.dot_dimension_numbers<[1], [0], [0], [1], [0, 0, 1, 1], [], []>} : vector<256x48xbf16>, vector<48x128xbf16>, vector<256x128xf32> -> vector<256x128xf32>
    %4 = arith.truncf %3 : vector<256x128xf32> to vector<256x128xbf16>
    %c0_3 = arith.constant 0 : index
    %c0_4 = arith.constant 0 : index
    %5 = vector.load %arg3[%c0_3, %c0_4] : memref<256x128xbf16, #tpu.memory_space<vmem>>, vector<256x128xbf16>
    tpu.vector_store %arg3[%c0_3, %c0_4], %4 {strides = array<i32>} : memref<256x128xbf16, #tpu.memory_space<vmem>>, vector<256x128xbf16>,
    return
  }
  func.func @transform_0(%arg0: i32) -> (i32, i32) {
    %c0_i32 = arith.constant 0 : i32
    %c0_i32_0 = arith.constant 0 : i32
    return %arg0, %c0_i32 : i32, i32
  }
  func.func @transform_1(%arg0: i32) -> (i32, i32) {
    %c0_i32 = arith.constant 0 : i32
    %c0_i32_0 = arith.constant 0 : i32
    %c0_i32_1 = arith.constant 0 : i32
    return %c0_i32, %c0_i32_0 : i32, i32
  }
  func.func @transform_2(%arg0: i32) -> (i32, i32) {
    %c0_i32 = arith.constant 0 : i32
    %c0_i32_0 = arith.constant 0 : i32
    return %arg0, %c0_i32 : i32, i32
  }
}

</mosaic_0001>

<bundles_post_ra>
// kernel: tpu_custom_call.1
= control target key start
LH: loop header
LB: loop body
LE: loop exit
PB: predicated region body
PF: predicated region fallthrough
CT: control target
= control target key end

     0   :  { %s611_s0 = inlined_call_operand.vmem [shape: f32[256,48], index: 0, kind: input, shape index: {}]   ;;  %s612_s1 = inlined_call_operand.vmem [shape: bf16[48,128], index: 1, kind: input, shape index: {}]   ;;  %s613_s2 = inlined_call_operand.hbm [shape: bf16[256,128], index: 2, kind: output, shape index: {}]  }
   0x1   :  { %v335_v0 = vld [vmem:[%s612_s1 + $0x10] sm:$0xff]  ;;  %v334_v1 = vld [vmem:[%s612_s1 + $0x8] sm:$0xff]  ;;  %v333_v2 = vld [vmem:[%s612_s1] sm:$0xff] }
   0x2   :  { %139 = vmatpush.bf16.msra.mxu0 %v335_v0  ;;  %431 = vmatpush.bf16.msra.mxu1 %v335_v0  ;;  %v13_v3 = vld [vmem:[%s611_s0] sm:$0xff]  ;;  %v14_v4 = vld [vmem:[%s611_s0 + $0x8] sm:$0xff] }
   0x3   :  { %432 = vmatpush.bf16.msra.mxu2 %v335_v0  ;;  %433 = vmatpush.bf16.msra.mxu3 %v335_v0  ;;  %v21_v5 = vld [vmem:[%s611_s0 + $0x40] sm:$0xff]  ;;  %v22_v6 = vld [vmem:[%s611_s0 + $0x48] sm:$0xff] }
   0x4   :  { %v29_v7 = vld [vmem:[%s611_s0 + $0x80] sm:$0xff]  ;;  %v30_v8 = vld [vmem:[%s611_s0 + $0x88] sm:$0xff] }
   0x5   :  { %v37_v9 = vld [vmem:[%s611_s0 + $0xc0] sm:$0xff]  ;;  %v38_v10 = vld [vmem:[%s611_s0 + $0xc8] sm:$0xff] }
   0x6   :  { %140 = vmatpush.bf16.msra.mxu0 %v334_v1  ;;  %434 = vmatpush.bf16.msra.mxu1 %v334_v1 }
   0x7   :  { %435 = vmatpush.bf16.msra.mxu2 %v334_v1  ;;  %436 = vmatpush.bf16.msra.mxu3 %v334_v1 }
   0x8   :  { %7 = vsyncpa [#allocation3], 0  ;;  %v45_v11 = vpack.c.bf16 %v14_v4, %v13_v3  ;;  %v49_v12 = vpack.c.bf16 %v22_v6, %v21_v5  ;;  %vm85_vm0 = vcmask 392192   ;;  %v53_v13 = vpack.c.bf16 %v30_v8, %v29_v7  ;;  %v15_v15 = vld [vmem:[%s611_s0 + $0x10] sm:$0xff]  ;;  %v16_v16 = vld [vmem:[%s611_s0 + $0x18] sm:$0xff]  ;;  %s293_s1 = sshll.u32 %s613_s2, 4  ;;  %s294_s1 = int_to_ptr.hbm [resolvable:$true] %s293_s1 }
   0x9   :  { %v57_v14 = vpack.c.bf16 %v38_v10, %v37_v9  ;;  %v23_v17 = vld [vmem:[%s611_s0 + $0x50] sm:$0xff]  ;;  %v24_v18 = vld [vmem:[%s611_s0 + $0x58] sm:$0xff]  ;;  %v46_v23 = vpack.c.bf16 %v16_v16, %v15_v15  ;;  %v17_v27 = vld [vmem:[%s611_s0 + $0x20] sm:$0xff]  ;;  %s470_s24 = smov 64   ;;  %s471_s25 = smov 4  }
   0xa   :  { %141 = vmatpush.bf16.msra.mxu0 %v333_v2  ;;  %437 = vmatpush.bf16.msra.mxu1 %v333_v2  ;;  %v31_v19 = vld [vmem:[%s611_s0 + $0x90] sm:$0xff]  ;;  %v32_v20 = vld [vmem:[%s611_s0 + $0x98] sm:$0xff]  ;;  %v50_v24 = vpack.c.bf16 %v24_v18, %v23_v17  ;;  %v18_v28 = vld [vmem:[%s611_s0 + $0x28] sm:$0xff] }
   0xb   :  { %438 = vmatpush.bf16.msra.mxu2 %v333_v2  ;;  %439 = vmatpush.bf16.msra.mxu3 %v333_v2  ;;  %v39_v21 = vld [vmem:[%s611_s0 + $0xd0] sm:$0xff]  ;;  %v40_v22 = vld [vmem:[%s611_s0 + $0xd8] sm:$0xff]  ;;  %v54_v25 = vpack.c.bf16 %v32_v20, %v31_v19  ;;  %v25_v29 = vld [vmem:[%s611_s0 + $0x60] sm:$0xff]  ;;  %v47_v35 = vpack.c.bf16 %v18_v28, %v17_v27 }
   0xc   :  { %v58_v26 = vpack.c.bf16 %v40_v22, %v39_v21  ;;  %v26_v30 = vld [vmem:[%s611_s0 + $0x68] sm:$0xff]  ;;  %v33_v31 = vld [vmem:[%s611_s0 + $0xa0] sm:$0xff]  ;;  %v19_v39 = vld [vmem:[%s611_s0 + $0x30] sm:$0xff] }
   0xd   :  { %317 = vmatmul.msk.bf16.vlgmr.msra.gmra.mxu0 %vm85_vm0, %v45_v11  ;;  %321 = vmatmul.msk.bf16.vlgmr.msra.gmra.mxu1 %vm85_vm0, %v49_v12  ;;  %v34_v32 = vld [vmem:[%s611_s0 + $0xa8] sm:$0xff]  ;;  %v41_v33 = vld [vmem:[%s611_s0 + $0xe0] sm:$0xff]  ;;  %v51_v36 = vpack.c.bf16 %v26_v30, %v25_v29  ;;  %v20_v40 = vld [vmem:[%s611_s0 + $0x38] sm:$0xff] }
   0xe   :  { %325 = vmatmul.msk.bf16.vlgmr.msra.gmra.mxu2 %vm85_vm0, %v53_v13  ;;  %329 = vmatmul.msk.bf16.vlgmr.msra.gmra.mxu3 %vm85_vm0, %v57_v14  ;;  %v42_v34 = vld [vmem:[%s611_s0 + $0xe8] sm:$0xff]  ;;  %v55_v37 = vpack.c.bf16 %v34_v32, %v33_v31  ;;  %v27_v41 = vld [vmem:[%s611_s0 + $0x70] sm:$0xff]  ;;  %v28_v42 = vld [vmem:[%s611_s0 + $0x78] sm:$0xff]  ;;  %v48_v47 = vpack.c.bf16 %v20_v40, %v19_v39 }
   0xf   :  { %v59_v38 = vpack.c.bf16 %v42_v34, %v41_v33  ;;  %v35_v43 = vld [vmem:[%s611_s0 + $0xb0] sm:$0xff]  ;;  %v36_v44 = vld [vmem:[%s611_s0 + $0xb8] sm:$0xff]  ;;  %v52_v48 = vpack.c.bf16 %v28_v42, %v27_v41 }
  0x10   :  { %v43_v45 = vld [vmem:[%s611_s0 + $0xf0] sm:$0xff]  ;;  %v44_v46 = vld [vmem:[%s611_s0 + $0xf8] sm:$0xff]  ;;  %v56_v49 = vpack.c.bf16 %v36_v44, %v35_v43  ;;  %s469_s0 = smov [#allocation2]  }
  0x11   :  { %v60_v50 = vpack.c.bf16 %v44_v46, %v43_v45  ;;  %s291_s21 = sshll.u32 %s469_s0, 4  ;;  %s292_s21 = int_to_ptr.vmem [resolvable:$true] %s291_s21 }
  0x1d   :  { %318 = vmatmul.msk.bf16.gmra.mxu0 %vm85_vm0, %v46_v23  ;;  %322 = vmatmul.msk.bf16.gmra.mxu1 %vm85_vm0, %v50_v24 }
  0x1e   :  { %326 = vmatmul.msk.bf16.gmra.mxu2 %vm85_vm0, %v54_v25  ;;  %330 = vmatmul.msk.bf16.gmra.mxu3 %vm85_vm0, %v58_v26 }
  0x2d   :  { %319 = vmatmul.msk.bf16.gmra.mxu0 %vm85_vm0, %v47_v35  ;;  %323 = vmatmul.msk.bf16.gmra.mxu1 %vm85_vm0, %v51_v36 }
  0x2e   :  { %327 = vmatmul.msk.bf16.gmra.mxu2 %vm85_vm0, %v55_v37  ;;  %331 = vmatmul.msk.bf16.gmra.mxu3 %vm85_vm0, %v59_v38 }
  0x3d   :  { %320 = vmatmul.msk.bf16.gmra.mxu0 %vm85_vm0, %v48_v47  ;;  %324 = vmatmul.msk.bf16.gmra.mxu1 %vm85_vm0, %v52_v48 }
  0x3e   :  { %328 = vmatmul.msk.bf16.gmra.mxu2 %vm85_vm0, %v56_v49  ;;  %332 = vmatmul.msk.bf16.gmra.mxu3 %vm85_vm0, %v60_v50 }
  0x8a   :  { %v143_v51 = vpop.f32.mrf.mxu0  ;;  %v163_v52 = vpop.f32.mrf.mxu1 }
  0x91   :  { %v183_v53 = vpop.f32.mrf.mxu2  ;;  %v203_v54 = vpop.f32.mrf.mxu3 }
  0x92   :  { %v145_v55 = vpop.f32.mrf.mxu0  ;;  %v165_v56 = vpop.f32.mrf.mxu1 }
  0x93   :  { %v339_v57 = vpack.c.bf16 %v145_v55, %v143_v51  ;;  %v359_v58 = vpack.c.bf16 %v165_v56, %v163_v52 }
  0x95   :  { %340 = vst [vmem:[#allocation2] sm:$0xff] %v339_v57  }
  0x96   :  { %419 = vst [vmem:[#allocation2 + $0x20] sm:$0xff] %v359_v58  }
  0x99   :  { %v185_v59 = vpop.f32.mrf.mxu2  ;;  %v205_v60 = vpop.f32.mrf.mxu3 }
  0x9a   :  { %v379_v61 = vpack.c.bf16 %v185_v59, %v183_v53  ;;  %v399_v62 = vpack.c.bf16 %v205_v60, %v203_v54  ;;  %v148_v63 = vpop.f32.mrf.mxu0  ;;  %v168_v0 = vpop.f32.mrf.mxu1 }
  0x9c   :  { %423 = vst [vmem:[#allocation2 + $0x40] sm:$0xff] %v379_v61  }
  0x9d   :  { %427 = vst [vmem:[#allocation2 + $0x60] sm:$0xff] %v399_v62  }
  0xa1   :  { %v188_v1 = vpop.f32.mrf.mxu2  ;;  %v208_v2 = vpop.f32.mrf.mxu3 }
  0xa2   :  { %v150_v3 = vpop.f32.mrf.mxu0  ;;  %v170_v4 = vpop.f32.mrf.mxu1 }
  0xa3   :  { %v344_v5 = vpack.c.bf16 %v150_v3, %v148_v63  ;;  %v364_v6 = vpack.c.bf16 %v170_v4, %v168_v0 }
  0xa5   :  { %416 = vst [vmem:[#allocation2 + $0x8] sm:$0xff] %v344_v5  }
  0xa6   :  { %420 = vst [vmem:[#allocation2 + $0x28] sm:$0xff] %v364_v6  }
  0xa9   :  { %v190_v7 = vpop.f32.mrf.mxu2  ;;  %v210_v8 = vpop.f32.mrf.mxu3 }
  0xaa   :  { %v384_v9 = vpack.c.bf16 %v190_v7, %v188_v1  ;;  %v404_v10 = vpack.c.bf16 %v210_v8, %v208_v2  ;;  %v153_v11 = vpop.f32.mrf.mxu0  ;;  %v173_v12 = vpop.f32.mrf.mxu1 }
  0xac   :  { %424 = vst [vmem:[#allocation2 + $0x48] sm:$0xff] %v384_v9  }
  0xad   :  { %428 = vst [vmem:[#allocation2 + $0x68] sm:$0xff] %v404_v10  }
  0xb1   :  { %v193_v13 = vpop.f32.mrf.mxu2  ;;  %v213_v14 = vpop.f32.mrf.mxu3 }
  0xb2   :  { %v155_v15 = vpop.f32.mrf.mxu0  ;;  %v175_v16 = vpop.f32.mrf.mxu1 }
  0xb3   :  { %v349_v17 = vpack.c.bf16 %v155_v15, %v153_v11  ;;  %v369_v18 = vpack.c.bf16 %v175_v16, %v173_v12 }
  0xb5   :  { %417 = vst [vmem:[#allocation2 + $0x10] sm:$0xff] %v349_v17  }
  0xb6   :  { %421 = vst [vmem:[#allocation2 + $0x30] sm:$0xff] %v369_v18  }
  0xb9   :  { %v195_v19 = vpop.f32.mrf.mxu2  ;;  %v215_v20 = vpop.f32.mrf.mxu3 }
  0xba   :  { %v389_v21 = vpack.c.bf16 %v195_v19, %v193_v13  ;;  %v409_v22 = vpack.c.bf16 %v215_v20, %v213_v14  ;;  %v158_v23 = vpop.f32.mrf.mxu0  ;;  %v178_v24 = vpop.f32.mrf.mxu1 }
  0xbc   :  { %425 = vst [vmem:[#allocation2 + $0x50] sm:$0xff] %v389_v21  }
  0xbd   :  { %429 = vst [vmem:[#allocation2 + $0x70] sm:$0xff] %v409_v22  }
  0xc1   :  { %v198_v25 = vpop.f32.mrf.mxu2  ;;  %v218_v26 = vpop.f32.mrf.mxu3 }
  0xc2   :  { %v160_v27 = vpop.f32.mrf.mxu0  ;;  %v180_v28 = vpop.f32.mrf.mxu1 }
  0xc3   :  { %v354_v29 = vpack.c.bf16 %v160_v27, %v158_v23  ;;  %v374_v30 = vpack.c.bf16 %v180_v28, %v178_v24 }
  0xc5   :  { %418 = vst [vmem:[#allocation2 + $0x18] sm:$0xff] %v354_v29  }
  0xc6   :  { %422 = vst [vmem:[#allocation2 + $0x38] sm:$0xff] %v374_v30  }
  0xc9   :  { %v200_v31 = vpop.f32.mrf.mxu2  ;;  %v220_v32 = vpop.f32.mrf.mxu3 }
  0xca   :  { %v394_v33 = vpack.c.bf16 %v200_v31, %v198_v25  ;;  %v414_v34 = vpack.c.bf16 %v220_v32, %v218_v26 }
  0xcc   :  { %426 = vst [vmem:[#allocation2 + $0x58] sm:$0xff] %v394_v33  }
  0xcd   :  { %430 = vst [vmem:[#allocation2 + $0x78] sm:$0xff] %v414_v34  }
  0xce   :  { %299 = dma.vmem_to_hbm [thread:$0]  %s292_s21, 2048, %s294_s1, [#allocation3], %s470_s24, %s470_s24, %s471_s25  }
  0xcf   :  { %467 = dma.done.wait [#allocation3], 2048  }
  0xd0   :  { %468 = vsyncadd [#allocation3], 4294965248 }
  0xd1   :  { %304 = vsyncpa [#allocation3], 1 }

</bundles_post_ra>
